<compile_context>
chip_gen: v6e
topology: v6e:2x2x1
jax: 0.10.0
libtpu: 0.0.40
codegen_flags: <defaults>
</compile_context>

<pallas_src>
import functools
import math

import jax
import jax.numpy as jnp
from jax import lax
from jax.experimental import pallas as pl


def _rdloss_kernel(x_ref, y_ref, o_ref, *, n_batch):
    # x_ref: (min(N,8), D) leading row-block of X -- only row 0 is consumed.
    # y_ref: (P, D) proxies.
    x0 = x_ref[0:1, :]
    y = y_ref[...]
    # Guarded upcast: no-op for f32, single per-tile cast for bf16 inputs
    # (v5e has no bf16 VPU/EUP path, so f32 math is required anyway).
    if x0.dtype != jnp.float32:
        x0 = x0.astype(jnp.float32)
    if y.dtype != jnp.float32:
        y = y.astype(jnp.float32)

    # Softmax numerator only: the softmax denominator cancels under the row
    # L2 normalization, so it is never formed.  (eps lands on sum(ex^2) >= 1,
    # numerically indistinguishable from the reference.)
    ex = jnp.exp(x0 - jnp.max(x0, axis=-1, keepdims=True))                # (1, D)

    # Deferred normalization: one (P,D) VPU multiply + lane reduce, then scale
    # the resulting (P,1) dots by two rsqrt factors (EUP) instead of
    # materializing normalized xn / yn tiles.
    dots = jnp.sum(ex * y, axis=-1, keepdims=True)                        # (P, 1)
    inv_x = lax.rsqrt(jnp.sum(ex * ex, axis=-1, keepdims=True) + 1e-12)   # (1, 1)
    inv_y = lax.rsqrt(jnp.sum(y * y, axis=-1, keepdims=True) + 1e-12)     # (P, 1)
    cos0 = dots * inv_y * inv_x                                           # (P, 1)

    # cos0 in [-1, 1] -> exp(-cos0) needs no max-subtraction.
    sum_exp = jnp.sum(jnp.exp(-cos0))
    # log(sum_exp / N) == log(sum_exp) - log(N); N is static (shape-derived).
    o_ref[...] = jnp.reshape(
        jnp.log(sum_exp) - jnp.float32(math.log(n_batch)), (1, 1))


@jax.jit
def rdloss_pallas(X, Y):
    N, D = X.shape
    P, D2 = Y.shape
    assert D == D2

    # Row-block for X: 8 rows (sublane-aligned) when N >= 8, else the full N.
    # The index_map pins block (0,0), so only these rows are ever DMA'd.
    bx = min(N, 8)

    kernel = functools.partial(_rdloss_kernel, n_batch=N)
    cost = pl.CostEstimate(
        flops=(P + 2) * D * 4,
        transcendentals=D + P + 2,
        bytes_accessed=(bx + P) * D * 4 + 4,
    )
    out = pl.pallas_call(
        kernel,
        out_shape=jax.ShapeDtypeStruct((1, 1), jnp.float32),
        in_specs=[
            pl.BlockSpec((bx, D), lambda: (0, 0)),
            pl.BlockSpec((P, D), lambda: (0, 0)),
        ],
        out_specs=pl.BlockSpec((1, 1), lambda: (0, 0)),
        cost_estimate=cost,
    )(X, Y)
    # Scalar extraction stays inside the same jit -> no extra dispatch.
    return out[0, 0]


def rdloss_ref(X, Y):
    # Pure-JAX reference of the PyTorch forward, for verification.
    sm = jax.nn.softmax(X.astype(jnp.float32), axis=-1)
    xn = sm / jnp.sqrt(jnp.sum(sm * sm, axis=1, keepdims=True) + 1e-12)
    y = Y.astype(jnp.float32)
    yn = y / jnp.sqrt(jnp.sum(y * y, axis=1, keepdims=True) + 1e-12)
    cos0 = (xn @ yn.T)[0]
    return jnp.log(jnp.sum(jnp.exp(-cos0)) / X.shape[0])


if __name__ == "__main__":
    # Module params: nb_classes=4 (mrg/alpha are unused in forward; Y is an input).
    nb_classes = 4
    N, D = 8, 32

    key = jax.random.PRNGKey(0)
    kx, ky = jax.random.split(key)
    X = jax.random.normal(kx, (N, D), dtype=jnp.float32)
    Y = jax.random.normal(ky, (nb_classes, D), dtype=jnp.float32)

    out = rdloss_pallas(X, Y)
    jax.block_until_ready(out)

    ref = rdloss_ref(X, Y)
    assert jnp.allclose(out, ref, atol=1e-5, rtol=1e-5), (out, ref)

    print("KERNEL_OK")
</pallas_src>

<mosaic_0001>
module attributes {stable_mosaic.version = 11 : i64} {
  func.func @_rdloss_kernel(%arg0: memref<8x32xf32, #tpu.memory_space<vmem>>, %arg1: memref<4x32xf32, #tpu.memory_space<vmem>>, %arg2: memref<1x1xf32, #tpu.memory_space<vmem>>) attributes {dimension_semantics = [], scalar_prefetch = 0 : i64, scratch_operands = 0 : i64, tpu.core_type = #tpu.core_type<tc>} {
    %c0 = arith.constant 0 : index
    %c0_0 = arith.constant 0 : index
    %0 = vector.load %arg0[%c0, %c0_0] : memref<8x32xf32, #tpu.memory_space<vmem>>, vector<1x32xf32>
    %c0_1 = arith.constant 0 : index
    %c0_2 = arith.constant 0 : index
    %1 = vector.load %arg1[%c0_1, %c0_2] : memref<4x32xf32, #tpu.memory_space<vmem>>, vector<4x32xf32>
    %cst = arith.constant dense<0xFF800000> : vector<1xf32>
    %2 = vector.multi_reduction <maximumf>, %0, %cst [1] : vector<1x32xf32> to vector<1xf32>
    %3 = vector.shape_cast %2 : vector<1xf32> to vector<1x1xf32>
    %4 = vector.broadcast %3 : vector<1x1xf32> to vector<1x32xf32>
    %5 = arith.subf %0, %4 : vector<1x32xf32>
    %6 = math.exp %5 : vector<1x32xf32>
    %7 = vector.broadcast %6 : vector<1x32xf32> to vector<4x32xf32>
    %8 = arith.mulf %7, %1 : vector<4x32xf32>
    %cst_3 = arith.constant dense<0.000000e+00> : vector<4xf32>
    %9 = vector.multi_reduction <add>, %8, %cst_3 [1] : vector<4x32xf32> to vector<4xf32>
    %10 = vector.shape_cast %9 : vector<4xf32> to vector<4x1xf32>
    %11 = arith.mulf %6, %6 : vector<1x32xf32>
    %cst_4 = arith.constant dense<0.000000e+00> : vector<1xf32>
    %12 = vector.multi_reduction <add>, %11, %cst_4 [1] : vector<1x32xf32> to vector<1xf32>
    %13 = vector.shape_cast %12 : vector<1xf32> to vector<1x1xf32>
    %cst_5 = arith.constant 9.99999996E-13 : f32
    %14 = vector.broadcast %cst_5 : f32 to vector<1x1xf32>
    %15 = arith.addf %13, %14 : vector<1x1xf32>
    %16 = math.rsqrt %15 : vector<1x1xf32>
    %17 = arith.mulf %1, %1 : vector<4x32xf32>
    %cst_6 = arith.constant dense<0.000000e+00> : vector<4xf32>
    %18 = vector.multi_reduction <add>, %17, %cst_6 [1] : vector<4x32xf32> to vector<4xf32>
    %19 = vector.shape_cast %18 : vector<4xf32> to vector<4x1xf32>
    %cst_7 = arith.constant 9.99999996E-13 : f32
    %20 = vector.broadcast %cst_7 : f32 to vector<4x1xf32>
    %21 = arith.addf %19, %20 : vector<4x1xf32>
    %22 = math.rsqrt %21 : vector<4x1xf32>
    %23 = arith.mulf %10, %22 : vector<4x1xf32>
    %24 = vector.broadcast %16 : vector<1x1xf32> to vector<4x1xf32>
    %25 = arith.mulf %23, %24 : vector<4x1xf32>
    %cst_8 = arith.constant 0.000000e+00 : f32
    %26 = vector.broadcast %cst_8 : f32 to vector<4x1xf32>
    %27 = arith.subf %26, %25 : vector<4x1xf32>
    %28 = math.exp %27 : vector<4x1xf32>
    %29 = vector.shape_cast %28 : vector<4x1xf32> to vector<1x4x1xf32>
    %cst_9 = arith.constant dense<0.000000e+00> : vector<1xf32>
    %30 = vector.multi_reduction <add>, %29, %cst_9 [1, 2] : vector<1x4x1xf32> to vector<1xf32>
    %31 = vector.shape_cast %30 : vector<1xf32> to vector<1x1x1xf32>
    %32 = vector.extract %31[0, 0, 0] : f32 from vector<1x1x1xf32>
    %33 = math.log %32 : f32
    %cst_10 = arith.constant 2.07944155 : f32
    %34 = arith.subf %33, %cst_10 : f32
    %35 = vector.broadcast %34 : f32 to vector<1x1xf32>
    %c0_11 = arith.constant 0 : index
    %c0_12 = arith.constant 0 : index
    %36 = vector.load %arg2[%c0_11, %c0_12] : memref<1x1xf32, #tpu.memory_space<vmem>>, vector<1x1xf32>
    tpu.vector_store %arg2[%c0_11, %c0_12], %35 {strides = array<i32>} : memref<1x1xf32, #tpu.memory_space<vmem>>, vector<1x1xf32>,
    return
  }
}

</mosaic_0001>

<bundles_post_ra>
// kernel: rdloss_pallas.1
= control target key start
LH: loop header
LB: loop body
LE: loop exit
PB: predicated region body
PF: predicated region fallthrough
CT: control target
= control target key end

     0   :  { %7 = vsyncpa [#allocation3], 0  ;;  %s225_s0 = inlined_call_operand.hbm [shape: f32[8,32], index: 0, kind: input, shape index: {}]   ;;  %s226_s1 = inlined_call_operand.hbm [shape: f32[4,32], index: 1, kind: input, shape index: {}]   ;;  %s227_s2 = inlined_call_operand.hbm [shape: f32[1,1], index: 2, kind: output, shape index: {}]  }
   0x1   :  { %8 = vsyncpa [#allocation6], 0 }
   0x2   :  { %9 = vsyncpa [#allocation4], 0  ;;  %s194_s9 = smov [#allocation2]   ;;  %s195_s11 = smov [#allocation5]  }
   0x3   :  { %s16_s10 = sshll.u32 %s194_s9, 4  ;;  %s26_s12 = sshll.u32 %s195_s11, 4  ;;  %s17_s10 = int_to_ptr.vmem [resolvable:$true] %s16_s10  ;;  %s27_s12 = int_to_ptr.vmem [resolvable:$true] %s26_s12 }
   0x4   :  { %s136_s13 = scalar_lea.vmem %s17_s10, 128  ;;  %p141_p1 = scmp.lt.s32.totalorder %s17_s10, %s17_s10 }
   0x5   :  { %p137_p0 = scmp.ne.s32.totalorder %s17_s10, %s136_s13  ;;  %p142_p2 = scmp.lt.s32.totalorder %s136_s13, %s136_s13 }
   0x7   :  { %p143_p3 = por %p142_p2, %p141_p1 }
   0x9   :  { %p144_p4 = pnand %p143_p3, %p137_p0 }
   0xb   :  { %147 = shalt.err (!%p144_p4)
}
   0xc   :  { %19 = dma.hbm_to_vmem [thread:$0]  %s225_s0, 128, %s17_s10, [#allocation3]  }
   0xd   :  { %s156_s16 = scalar_lea.vmem %s27_s12, 64  ;;  %p161_p6 = scmp.lt.s32.totalorder %s27_s12, %s27_s12 }
   0xe   :  { %p157_p5 = scmp.ne.s32.totalorder %s27_s12, %s156_s16  ;;  %p162_p7 = scmp.lt.s32.totalorder %s156_s16, %s156_s16 }
  0x10   :  { %p163_p8 = por %p162_p7, %p161_p6 }
  0x12   :  { %p164_p9 = pnand %p163_p8, %p157_p5 }
  0x14   :  { %167 = shalt.err (!%p164_p9)
}
  0x15   :  { %29 = dma.hbm_to_vmem [thread:$0]  %s226_s1, 64, %s27_s12, [#allocation6]  }
  0x16   :  { %188 = dma.done.wait [#allocation3], 128  }
  0x17   :  { %189 = vsyncadd [#allocation3], 4294967168 }
  0x18   :  { %190 = dma.done.wait [#allocation6], 64  }
  0x19   :  { %191 = vsyncadd [#allocation6], 4294967232  ;;  %vm38_vm0 = vcmask 253952   ;;  %v36_v0 = vld [vmem:[#allocation2] sm:$0x1]  ;;  %vm50_vm1 = vcmask 257024   ;;  %v45_v8 = vlaneseq }
  0x1a   :  { %v39_v1 = vsel %vm38_vm0, %v36_v0, -inf  ;;  %v37_v2 = vld [vmem:[#allocation5] sm:$0xf]  ;;  %vm75_vm2 = vcmask 3072   ;;  %s196_s1 = smov [#allocation7]   ;;  %vm92_vm3 = vcmask 0  }
  0x1b   :  { %40 = vmax.xlane.f32.xlu0 %v39_v1  ;;  %v60_v3 = vmul.f32 %v37_v2, %v37_v2  ;;  %v46_v9 = vshrl.u32 %v45_v8, 7  ;;  %s100_s19 = sshll.u32 %s196_s1, 4  ;;  %s101_s19 = int_to_ptr.vmem [resolvable:$true] %s100_s19 }
  0x1c   :  { %s168_s22 = scalar_lea.vmem %s101_s19, 16  ;;  %s172_s23 = scalar_lea.vmem %s101_s19, 32 }
  0x1d   :  { %v61_v4 = vsel %vm50_vm1, %v60_v3, 0.0  ;;  %v47_v10 = vsub.s32 0, %v46_v9  ;;  %p169_p10 = scmp.ne.s32.totalorder %s101_s19, %s168_s22  ;;  %p173_p11 = scmp.lt.s32.totalorder %s101_s19, %s101_s19 }
  0x1e   :  { %62 = vadd.xlane.f32.xlu1 %v61_v4  ;;  %p174_p12 = scmp.lt.s32.totalorder %s172_s23, %s168_s22 }
  0x20   :  { %p175_p13 = por %p174_p12, %p173_p11 }
  0x22   :  { %p176_p0 = pnand %p175_p13, %p169_p10 }
  0xa4   :  { %v41_v5 = vpop.xlane.xlu0 %40 }
  0xa5   :  { %v42_v6 = vsub.f32 %v36_v0, %v41_v5 }
  0xa7   :  { %v43_v7 = vmul.f32 1.442695, %v42_v6  ;;  %v63_v17 = vpop.xlane.xlu1 %62 }
  0xa8   :  { %v64_v18 = vadd.f32 1e-12, %v63_v17 }
  0xa9   :  { %118 = vpow2.f32 %v43_v7 }
  0xaa   :  { %120 = vrsqrt.f32 %v64_v18 }
  0xb6   :  { %v119_v11 = vpop.eup %118 }
  0xb7   :  { %v54_v12 = vmul.f32 %v119_v11, %v119_v11  ;;  %v48_v13 = vrot.slane %v119_v11, %v47_v10  ;;  %v121_v21 = vpop.eup %120 }
  0xb9   :  { %v55_v14 = vsel %vm38_vm0, %v54_v12, 0.0  ;;  %v49_v15 = vmul.f32 %v48_v13, %v37_v2 }
  0xba   :  { %56 = vadd.xlane.f32.xlu0 %v55_v14 }
  0xbb   :  { %v51_v16 = vsel %vm50_vm1, %v49_v15, 0.0 }
  0xbc   :  { %52 = vadd.xlane.f32.xlu1 %v51_v16 }
 0x143   :  { %v57_v19 = vpop.xlane.xlu0 %56 }
 0x144   :  { %v58_v20 = vadd.f32 1e-12, %v57_v19 }
 0x145   :  { %v53_v22 = vpop.xlane.xlu1 %52 }
 0x146   :  { %122 = vrsqrt.f32 %v58_v20  ;;  %v66_v25 = vmul.f32 %v121_v21, %v53_v22 }
 0x153   :  { %v123_v23 = vpop.eup %122 }
 0x154   :  { %v70_v24 = vrot.slane %v123_v23, %v47_v10 }
 0x156   :  { %v71_v26 = vmul.f32 %v70_v24, %v66_v25 }
 0x158   :  { %v72_v27 = vsub.f32 0.0, %v71_v26 }
 0x15a   :  { %v73_v28 = vmul.f32 1.442695, %v72_v27 }
 0x15c   :  { %124 = vpow2.f32 %v73_v28 }
 0x169   :  { %v125_v29 = vpop.eup %124 }
 0x16a   :  { %v76_v30 = vsel %vm75_vm2, %v125_v29, 0.0 }
 0x16b   :  { %77 = vadd.xlane.f32.xlu0 %v76_v30 }
 0x1f4   :  { %v78_v31 = vpop.xlane.xlu0 %77 }
 0x1f5   :  { %v79_v32 = vrot.slane %v78_v31, 4 }
 0x1f7   :  { %v80_v33 = vadd.f32 %v79_v32, %v78_v31 }
 0x1f9   :  { %v81_v34 = vrot.slane %v80_v33, 2 }
 0x1fb   :  { %v82_v35 = vadd.f32 %v81_v34, %v80_v33 }
 0x1fd   :  { %v83_v36 = vrot.slane %v82_v35, 1 }
 0x1ff   :  { %v84_v37 = vadd.f32 %v83_v36, %v82_v35 }
 0x201   :  { %111 = vpush %v84_v37 }
 0x232   :  { %s112_s0 = spop %111 }
 0x233   :  { %v86_v38 = vstv %s112_s0 }
 0x234   :  { %126 = vlog2.f32 %v86_v38 }
 0x241   :  { %v127_v39 = vpop.eup %126 }
 0x242   :  { %v88_v40 = vmul.f32 0.6931472, %v127_v39 }
 0x244   :  { %113 = vpush %v88_v40 }
 0x275   :  { %s114_s20 = spop %113 }
 0x276   :  { %s110_s21 = sadd.f32 -2.0794415, %s114_s20 }
 0x278   :  { %v91_v41 = vstv %s110_s21 }
 0x279   :  { %93 = vst.msk [vmem:[#allocation7] sm:$0x1] %vm92_vm3, %v91_v41 }
 0x27a   :  { %179 = shalt.err (!%p176_p0)
}
 0x27b   :  { %103 = dma.vmem_to_hbm [thread:$0]  %s101_s19, 16, %s227_s2, [#allocation4]  }
 0x27c   :  { %192 = dma.done.wait [#allocation4], 16  }
 0x27d   :  { %193 = vsyncadd [#allocation4], 4294967280 }
 0x27e   :  { %107 = vsyncpa [#allocation3], 1 }
 0x27f   :  { %108 = vsyncpa [#allocation6], 1 }
 0x280   :  { %109 = vsyncpa [#allocation4], 1 }

</bundles_post_ra>
